<compile_context>
chip_gen: v7x
topology: tpu7x:2x2x1
jax: 0.10.0
libtpu: 0.0.40
codegen_flags: <defaults>
</compile_context>

<pallas_src>
import jax
import jax.numpy as jnp
from jax.experimental import pallas as pl
from jax.experimental.pallas import tpu as pltpu


def _round_up(x, m):
    return ((x + m - 1) // m) * m


def _vmem_capacity_bytes():
    """Physical VMEM per TensorCore; conservative fallback if the query is unavailable."""
    try:
        info = pltpu.get_tpu_info()
        for name in ("vmem_capacity_bytes", "vmem_bytes", "vmem_size_bytes"):
            v = getattr(info, name, None)
            if v:
                return int(v)
    except Exception:
        pass
    return 64 * 1024 * 1024          # v7x per-TC size; safe lower bound for v5e/v6e too


def _tile_bytes(rows, cols, itemsize):
    """VMEM footprint of a (rows, cols) tile: lane-pad to 128, sublane-pad per dtype."""
    sub = 32 // itemsize
    return _round_up(max(rows, 1), sub) * _round_up(max(cols, 1), 128) * itemsize


def _make_kernel(B_TILE, L_OUT_PAD, F_PAD, POOL_K, P, compute_dtype):
    def kernel(slab_ref, wconv_ref, bconv_ref, w1_ref, b1_ref, w2_ref, b2_ref, out_ref):
        # ---- Conv1d as ONE im2col MXU matmul (M = B_TILE*L_OUT_PAD, depth = K*C) ----
        conv = jnp.dot(slab_ref[...], wconv_ref[...],
                       preferred_element_type=jnp.float32)            # (M, F_PAD) f32
        conv = jnp.maximum(conv + bconv_ref[...], 0.0)                # bias + ReLU (f32)
        # L_OUT_PAD % 8 == 0 -> sublane split is tile-aligned (no relayout).
        conv = conv.reshape(B_TILE, L_OUT_PAD, F_PAD)

        # ---- MaxPool1d(kernel=POOL_K, stride=POOL_K), floor mode (tail rows dropped) ----
        # Every segment is a full 128-lane F_PAD slab, so the p-major concat is
        # lane-aligned; padded L_OUT rows never fall inside a pooling window.
        segs = [jnp.max(conv[:, p * POOL_K:(p + 1) * POOL_K, :], axis=1) for p in range(P)]
        flat = segs[0] if P == 1 else jnp.concatenate(segs, axis=-1)   # (B_TILE, P*F_PAD)

        # TODO(synk): nn.Dropout is identity at inference (eval mode); training-mode mask omitted.

        # ---- fc1 + ReLU, fc2 + ReLU (operands in compute_dtype, f32 accumulation) ----
        h1 = jnp.dot(flat.astype(compute_dtype), w1_ref[...],
                     preferred_element_type=jnp.float32) + b1_ref[...]
        h1 = jnp.maximum(h1, 0.0)
        h2 = jnp.dot(h1.astype(compute_dtype), w2_ref[...],
                     preferred_element_type=jnp.float32) + b2_ref[...]
        out_ref[...] = jnp.maximum(h2, 0.0).astype(out_ref.dtype)     # spec applies ReLU to logits

    return kernel


def pack_params(wc, bc, w1, b1, w2, b2, input_length, compute_dtype=jnp.bfloat16):
    """One-time repack of PyTorch-shaped weights into lane-dense kernel layouts.

    wc (F, C, K), bc (F,), w1 (H, F*P) [torch channel-major flatten], b1 (H,),
    w2 (NL, H), b2 (NL,).  Call once at parameter-load time, not per forward.
    """
    F, C, K = wc.shape
    H = w1.shape[0]
    NL = w2.shape[0]
    L = int(input_length)
    POOL_K = min(K * 10, L - 1)
    L_OUT = L - K + 1
    P = (L_OUT - POOL_K) // POOL_K + 1            # floor-mode pooled length
    fc1_in_len = int(L / POOL_K) * F              # as computed by the PyTorch module
    assert fc1_in_len == P * F and w1.shape[1] == fc1_in_len, (
        "fc1_in_len inconsistent with pooled output size (the PyTorch module itself "
        "cannot run this (input_length, kernel_length) combination)")

    # Lane-dense feature paddings.  F > 128 is padded to a multiple of 256 so each conv
    # matmul pass fills the 256-wide MXU on v6e/v7x (128 is already optimal otherwise).
    F_PAD = _round_up(F, 128) if F <= 128 else _round_up(F, 256)
    H_PAD = _round_up(H, 128)
    NL_PAD = _round_up(NL, 128)

    # Conv weights: (F, C, K) -> (K, C, F) -> (K*C, F) -> zero-pad filters -> (K*C, F_PAD)
    wconv = jnp.transpose(wc, (2, 1, 0)).reshape(K * C, F)
    wconv = jnp.pad(wconv, ((0, 0), (0, F_PAD - F))).astype(compute_dtype)
    bconv = jnp.pad(bc, (0, F_PAD - F)).reshape(1, F_PAD).astype(jnp.float32)

    # fc1: torch flat column index is f*P + p; kernel flat index is p*F_PAD + f.
    w1_r = jnp.transpose(w1.reshape(H, F, P), (0, 2, 1))                  # (H, P, F)
    w1_r = jnp.pad(w1_r, ((0, H_PAD - H), (0, 0), (0, F_PAD - F)))        # (H_PAD, P, F_PAD)
    w1_k = jnp.transpose(w1_r.reshape(H_PAD, P * F_PAD)).astype(compute_dtype)
    b1_k = jnp.pad(b1, (0, H_PAD - H)).reshape(1, H_PAD).astype(jnp.float32)

    w2_k = jnp.pad(jnp.transpose(w2), ((0, H_PAD - H), (0, NL_PAD - NL))).astype(compute_dtype)
    b2_k = jnp.pad(b2, (0, NL_PAD - NL)).reshape(1, NL_PAD).astype(jnp.float32)

    meta = dict(L=L, C=C, K=K, F=F, H=H, NL=NL, POOL_K=POOL_K, P=P, L_OUT=L_OUT,
                F_PAD=F_PAD, H_PAD=H_PAD, NL_PAD=NL_PAD,
                compute_dtype=jnp.dtype(compute_dtype))
    return (wconv, bconv, w1_k, b1_k, w2_k, b2_k), meta


def tweet_classifier_forward(x, packed, meta, max_b_tile=None):
    """x: (B, input_length, one_hot_length) float.  Returns (B, nr_languages) float32."""
    wconv, bconv, w1_k, b1_k, w2_k, b2_k = packed
    L, C, K = meta["L"], meta["C"], meta["K"]
    F_PAD, H_PAD, NL_PAD = meta["F_PAD"], meta["H_PAD"], meta["NL_PAD"]
    POOL_K, P, NL, L_OUT = meta["POOL_K"], meta["P"], meta["NL"], meta["L_OUT"]
    compute_dtype = meta["compute_dtype"]
    e_c = jnp.dtype(compute_dtype).itemsize
    sub = 32 // e_c                        # sublane pack: 8 for f32, 16 for bf16
    KC = K * C
    L_OUT_PAD = _round_up(L_OUT, 8)        # conv output is f32 -> 8-row sublane tiles
    B = x.shape[0]

    # ---- VMEM-driven batch tiling (lane/sublane padding + double-buffering counted) ----
    vmem_cap = _vmem_capacity_bytes()
    vmem_limit = int(vmem_cap * 0.80)      # ~102 MiB on v5e/v6e (128 MiB), ~51 MiB on v7x (64 MiB)
    budget = int(vmem_limit * 0.90)        # size the working set below the scoped limit

    weights_bytes = 2 * (                  # counted double-buffered (worst case / fallback path)
        _tile_bytes(KC, F_PAD, e_c) + _tile_bytes(P * F_PAD, H_PAD, e_c)
        + _tile_bytes(H_PAD, NL_PAD, e_c)
        + _tile_bytes(1, F_PAD, 4) + _tile_bytes(1, H_PAD, 4) + _tile_bytes(1, NL_PAD, 4))
    per_row = (2 * L_OUT_PAD * _round_up(KC, 128) * e_c     # slab block (double-buffered, lane-padded)
               + 2 * NL_PAD * 4                             # output block (double-buffered)
               + L_OUT_PAD * F_PAD * 4                      # f32 conv intermediate
               + P * F_PAD * (4 + e_c)                      # pooled flat (+ compute-dtype cast)
               + H_PAD * (4 + e_c) + NL_PAD * 4)            # h1 (+ cast), h2
    avail = budget - weights_bytes
    bt = max(sub, (max(avail, 0) // per_row) // sub * sub)
    if max_b_tile is not None:
        bt = min(bt, max(sub, (int(max_b_tile) // sub) * sub))

    b_ceil = _round_up(B, sub)
    if b_ceil > sub:
        # Keep >= 2 grid steps: enables DMA/compute overlap and lets
        # dimension_semantics=("parallel",) shard batch tiles across v7x's 2 TensorCores.
        bt = min(bt, _round_up((b_ceil + 1) // 2, sub))
    B_TILE = min(bt, b_ceil)
    B_pad = _round_up(B, B_TILE)
    grid = (B_pad // B_TILE,)

    # ---- im2col slab built ONCE in the wrapper (fused with pad + dtype cast):
    #      row (b*L_OUT_PAD + t), column (k*C + c) holds x[b, t+k, c]. ----
    x_p = x if B_pad == B else jnp.pad(x, ((0, B_pad - B), (0, 0), (0, 0)))
    slab = jnp.concatenate([x_p[:, k:k + L_OUT, :] for k in range(K)], axis=-1)
    slab = jnp.pad(slab, ((0, 0), (0, L_OUT_PAD - L_OUT), (0, 0)))
    slab = slab.reshape(B_pad * L_OUT_PAD, KC).astype(compute_dtype)

    kernel = _make_kernel(B_TILE, L_OUT_PAD, F_PAD, POOL_K, P, compute_dtype)

    flops = 2 * B_pad * (L_OUT * KC * F_PAD + P * F_PAD * H_PAD + H_PAD * NL_PAD)
    bytes_accessed = (int(slab.size) * e_c + B_pad * NL_PAD * 4
                      + sum(int(w.size) * w.dtype.itemsize for w in packed))
    cost = pl.CostEstimate(flops=int(flops), transcendentals=0,
                           bytes_accessed=int(bytes_accessed))

    out_shape = jax.ShapeDtypeStruct((B_pad, NL_PAD), jnp.float32)
    out_spec = pl.BlockSpec((B_TILE, NL_PAD), lambda b: (b, 0))   # lane-dense (128-wide) store
    compiler_params = pltpu.CompilerParams(
        dimension_semantics=("parallel",), vmem_limit_bytes=int(vmem_limit))

    def build(weight_mode):
        def wspec(arr):
            if weight_mode is None:
                return pl.BlockSpec(arr.shape, lambda b: (0, 0))
            return pl.BlockSpec(arr.shape, lambda b: (0, 0), pipeline_mode=weight_mode)
        in_specs = [pl.BlockSpec((B_TILE * L_OUT_PAD, KC), lambda b: (b, 0)),
                    wspec(wconv), wspec(bconv), wspec(w1_k),
                    wspec(b1_k), wspec(w2_k), wspec(b2_k)]
        return pl.pallas_call(kernel, out_shape=out_shape, grid=grid,
                              in_specs=in_specs, out_specs=out_spec,
                              compiler_params=compiler_params, cost_estimate=cost)

    args = (slab, wconv, bconv, w1_k, b1_k, w2_k, b2_k)
    try:
        # Weights/biases are grid-invariant: single-buffer them (halves their VMEM).
        out = build(pl.Buffered(1))(*args)
    except Exception:
        out = build(None)(*args)          # fall back to default double-buffered specs

    return out[:B, :NL]


def reference_forward(x, wc, bc, w1, b1, w2, b2):
    """Plain-JAX mirror of the PyTorch forward (sanity check)."""
    B, L, C = x.shape
    F, _, K = wc.shape
    POOL_K = min(K * 10, L - 1)
    L_OUT = L - K + 1
    P = (L_OUT - POOL_K) // POOL_K + 1
    windows = jnp.stack([x[:, k:k + L_OUT, :] for k in range(K)], axis=-1)   # (B, L_OUT, C, K)
    conv = jnp.einsum('blck,fck->blf', windows, wc) + bc                     # (B, L_OUT, F)
    conv = jnp.maximum(conv, 0.0)
    pooled = jnp.stack([jnp.max(conv[:, p * POOL_K:(p + 1) * POOL_K, :], axis=1)
                        for p in range(P)], axis=-1)                         # (B, F, P)
    flat = pooled.reshape(B, F * P)                                          # torch flatten order
    h1 = jnp.maximum(flat @ w1.T + b1, 0.0)
    h2 = jnp.maximum(h1 @ w2.T + b2, 0.0)
    return h2


if __name__ == "__main__":
    key = jax.random.PRNGKey(0)

    def make_model(k, input_length, one_hot_length, kernel_length, nr_filters,
                   nr_hidden, nr_languages):
        pool_k = min(kernel_length * 10, input_length - 1)
        fc1_in_len = int(input_length / pool_k) * nr_filters
        kwc, kbc, kw1, kb1, kw2, kb2 = jax.random.split(k, 6)
        wc = 0.1 * jax.random.normal(kwc, (nr_filters, one_hot_length, kernel_length), jnp.float32)
        bc = 0.1 * jax.random.normal(kbc, (nr_filters,), jnp.float32)
        w1 = 0.1 * jax.random.normal(kw1, (nr_hidden, fc1_in_len), jnp.float32)
        b1 = 0.1 * jax.random.normal(kb1, (nr_hidden,), jnp.float32)
        w2 = 0.1 * jax.random.normal(kw2, (nr_languages, nr_hidden), jnp.float32)
        b2 = 0.1 * jax.random.normal(kb2, (nr_languages,), jnp.float32)
        return wc, bc, w1, b1, w2, b2

    k1, k2, kx1, kx2 = jax.random.split(key, 4)

    # --- config 1: tiny smoke test (single pool segment, single grid step), f32 + bf16 ---
    params1 = make_model(k1, input_length=16, one_hot_length=8, kernel_length=2,
                         nr_filters=16, nr_hidden=32, nr_languages=5)
    x1 = jax.random.normal(kx1, (2, 16, 8), jnp.float32)
    ref1 = jax.block_until_ready(reference_forward(x1, *params1))

    packed1f, meta1f = pack_params(*params1, input_length=16, compute_dtype=jnp.float32)
    out1f = jax.block_until_ready(tweet_classifier_forward(x1, packed1f, meta1f))
    assert out1f.shape == ref1.shape == (2, 5)
    assert jnp.allclose(out1f, ref1, atol=1e-2, rtol=1e-2), "Pallas mismatch (config 1, f32)"

    packed1b, meta1b = pack_params(*params1, input_length=16)            # default bf16 operands
    out1b = jax.block_until_ready(tweet_classifier_forward(x1, packed1b, meta1b))
    assert jnp.allclose(out1b, ref1, atol=2e-2, rtol=2e-2), "Pallas mismatch (config 1, bf16)"

    # --- config 2: multi-segment pooling (P=3), multi-step batch grid + batch padding ---
    params2 = make_model(k2, input_length=64, one_hot_length=8, kernel_length=2,
                         nr_filters=16, nr_hidden=32, nr_languages=5)
    x2 = jax.random.normal(kx2, (37, 64, 8), jnp.float32)
    ref2 = jax.block_until_ready(reference_forward(x2, *params2))
    packed2, meta2 = pack_params(*params2, input_length=64)              # default bf16 operands

    out2 = jax.block_until_ready(tweet_classifier_forward(x2, packed2, meta2))  # auto tile -> 2 steps
    assert out2.shape == ref2.shape == (37, 5)
    assert jnp.allclose(out2, ref2, atol=2e-2, rtol=2e-2), "Pallas mismatch (config 2, auto tile)"

    out2b = jax.block_until_ready(tweet_classifier_forward(x2, packed2, meta2, max_b_tile=16))
    assert jnp.allclose(out2b, ref2, atol=2e-2, rtol=2e-2), "Pallas mismatch (config 2, forced tile)"

    print("KERNEL_OK")
</pallas_src>

<mosaic_0001>
module attributes {stable_mosaic.version = 11 : i64} {
  func.func @kernel(%arg0: i32, %arg1: memref<128x16xf32, #tpu.memory_space<vmem>>, %arg2: memref<16x128xf32, #tpu.memory_space<vmem>>, %arg3: memref<1x128xf32, #tpu.memory_space<vmem>>, %arg4: memref<128x128xf32, #tpu.memory_space<vmem>>, %arg5: memref<1x128xf32, #tpu.memory_space<vmem>>, %arg6: memref<128x128xf32, #tpu.memory_space<vmem>>, %arg7: memref<1x128xf32, #tpu.memory_space<vmem>>, %arg8: memref<8x128xf32, #tpu.memory_space<vmem>>) attributes {dimension_semantics = [#tpu.dimension_semantics<parallel>], iteration_bounds = array<i64: 1>, scalar_prefetch = 0 : i64, scratch_operands = 0 : i64, tpu.core_type = #tpu.core_type<tc>, window_params = [{transform_indices = @transform_0, window_bounds = array<i64: 128, 16>}, {pipeline_mode = #tpu.pipeline_mode<synchronous>, transform_indices = @transform_1, window_bounds = array<i64: 16, 128>}, {pipeline_mode = #tpu.pipeline_mode<synchronous>, transform_indices = @transform_2, window_bounds = array<i64: 1, 128>}, {pipeline_mode = #tpu.pipeline_mode<synchronous>, transform_indices = @transform_3, window_bounds = array<i64: 128, 128>}, {pipeline_mode = #tpu.pipeline_mode<synchronous>, transform_indices = @transform_4, window_bounds = array<i64: 1, 128>}, {pipeline_mode = #tpu.pipeline_mode<synchronous>, transform_indices = @transform_5, window_bounds = array<i64: 128, 128>}, {pipeline_mode = #tpu.pipeline_mode<synchronous>, transform_indices = @transform_6, window_bounds = array<i64: 1, 128>}, {transform_indices = @transform_7, window_bounds = array<i64: 8, 128>}]} {
    %c0 = arith.constant 0 : index
    %c0_0 = arith.constant 0 : index
    %0 = vector.load %arg1[%c0, %c0_0] : memref<128x16xf32, #tpu.memory_space<vmem>>, vector<128x16xf32>
    %c0_1 = arith.constant 0 : index
    %c0_2 = arith.constant 0 : index
    %1 = vector.load %arg2[%c0_1, %c0_2] : memref<16x128xf32, #tpu.memory_space<vmem>>, vector<16x128xf32>
    %cst = arith.constant dense<0.000000e+00> : vector<128x128xf32>
    %2 = tpu.matmul %0, %1, %cst {dimension_numbers = #tpu.dot_dimension_numbers<[1], [0], [0], [1], [0, 0, 1, 1], [], []>} : vector<128x16xf32>, vector<16x128xf32>, vector<128x128xf32> -> vector<128x128xf32>
    %c0_3 = arith.constant 0 : index
    %c0_4 = arith.constant 0 : index
    %3 = vector.load %arg3[%c0_3, %c0_4] : memref<1x128xf32, #tpu.memory_space<vmem>>, vector<1x128xf32>
    %4 = vector.broadcast %3 : vector<1x128xf32> to vector<128x128xf32>
    %5 = arith.addf %2, %4 : vector<128x128xf32>
    %cst_5 = arith.constant 0.000000e+00 : f32
    %6 = vector.broadcast %cst_5 : f32 to vector<128x128xf32>
    %7 = arith.maximumf %5, %6 : vector<128x128xf32>
    %8 = vector.shape_cast %7 : vector<128x128xf32> to vector<8x16x128xf32>
    %9 = vector.extract_strided_slice %8 {offsets = [0, 0, 0], sizes = [8, 15, 128], strides = [1, 1, 1]} : vector<8x16x128xf32> to vector<8x15x128xf32>
    %cst_6 = arith.constant dense<0xFF800000> : vector<8x128xf32>
    %10 = vector.multi_reduction <maximumf>, %9, %cst_6 [1] : vector<8x15x128xf32> to vector<8x128xf32>
    %c0_7 = arith.constant 0 : index
    %c0_8 = arith.constant 0 : index
    %11 = vector.load %arg4[%c0_7, %c0_8] : memref<128x128xf32, #tpu.memory_space<vmem>>, vector<128x128xf32>
    %cst_9 = arith.constant dense<0.000000e+00> : vector<8x128xf32>
    %12 = tpu.matmul %10, %11, %cst_9 {dimension_numbers = #tpu.dot_dimension_numbers<[1], [0], [0], [1], [0, 0, 1, 1], [], []>} : vector<8x128xf32>, vector<128x128xf32>, vector<8x128xf32> -> vector<8x128xf32>
    %c0_10 = arith.constant 0 : index
    %c0_11 = arith.constant 0 : index
    %13 = vector.load %arg5[%c0_10, %c0_11] : memref<1x128xf32, #tpu.memory_space<vmem>>, vector<1x128xf32>
    %14 = vector.broadcast %13 : vector<1x128xf32> to vector<8x128xf32>
    %15 = arith.addf %12, %14 : vector<8x128xf32>
    %cst_12 = arith.constant 0.000000e+00 : f32
    %16 = vector.broadcast %cst_12 : f32 to vector<8x128xf32>
    %17 = arith.maximumf %15, %16 : vector<8x128xf32>
    %c0_13 = arith.constant 0 : index
    %c0_14 = arith.constant 0 : index
    %18 = vector.load %arg6[%c0_13, %c0_14] : memref<128x128xf32, #tpu.memory_space<vmem>>, vector<128x128xf32>
    %cst_15 = arith.constant dense<0.000000e+00> : vector<8x128xf32>
    %19 = tpu.matmul %17, %18, %cst_15 {dimension_numbers = #tpu.dot_dimension_numbers<[1], [0], [0], [1], [0, 0, 1, 1], [], []>} : vector<8x128xf32>, vector<128x128xf32>, vector<8x128xf32> -> vector<8x128xf32>
    %c0_16 = arith.constant 0 : index
    %c0_17 = arith.constant 0 : index
    %20 = vector.load %arg7[%c0_16, %c0_17] : memref<1x128xf32, #tpu.memory_space<vmem>>, vector<1x128xf32>
    %21 = vector.broadcast %20 : vector<1x128xf32> to vector<8x128xf32>
    %22 = arith.addf %19, %21 : vector<8x128xf32>
    %cst_18 = arith.constant 0.000000e+00 : f32
    %23 = vector.broadcast %cst_18 : f32 to vector<8x128xf32>
    %24 = arith.maximumf %22, %23 : vector<8x128xf32>
    %c0_19 = arith.constant 0 : index
    %c0_20 = arith.constant 0 : index
    %25 = vector.load %arg8[%c0_19, %c0_20] : memref<8x128xf32, #tpu.memory_space<vmem>>, vector<8x128xf32>
    tpu.vector_store %arg8[%c0_19, %c0_20], %24 {strides = array<i32>} : memref<8x128xf32, #tpu.memory_space<vmem>>, vector<8x128xf32>,
    return
  }
  func.func @transform_0(%arg0: i32) -> (i32, i32) {
    %c0_i32 = arith.constant 0 : i32
    %c0_i32_0 = arith.constant 0 : i32
    return %arg0, %c0_i32 : i32, i32
  }
  func.func @transform_1(%arg0: i32) -> (i32, i32) {
    %c0_i32 = arith.constant 0 : i32
    %c0_i32_0 = arith.constant 0 : i32
    %c0_i32_1 = arith.constant 0 : i32
    return %c0_i32, %c0_i32_0 : i32, i32
  }
  func.func @transform_2(%arg0: i32) -> (i32, i32) {
    %c0_i32 = arith.constant 0 : i32
    %c0_i32_0 = arith.constant 0 : i32
    %c0_i32_1 = arith.constant 0 : i32
    return %c0_i32, %c0_i32_0 : i32, i32
  }
  func.func @transform_3(%arg0: i32) -> (i32, i32) {
    %c0_i32 = arith.constant 0 : i32
    %c0_i32_0 = arith.constant 0 : i32
    %c0_i32_1 = arith.constant 0 : i32
    return %c0_i32, %c0_i32_0 : i32, i32
  }
  func.func @transform_4(%arg0: i32) -> (i32, i32) {
    %c0_i32 = arith.constant 0 : i32
    %c0_i32_0 = arith.constant 0 : i32
    %c0_i32_1 = arith.constant 0 : i32
    return %c0_i32, %c0_i32_0 : i32, i32
  }
  func.func @transform_5(%arg0: i32) -> (i32, i32) {
    %c0_i32 = arith.constant 0 : i32
    %c0_i32_0 = arith.constant 0 : i32
    %c0_i32_1 = arith.constant 0 : i32
    return %c0_i32, %c0_i32_0 : i32, i32
  }
  func.func @transform_6(%arg0: i32) -> (i32, i32) {
    %c0_i32 = arith.constant 0 : i32
    %c0_i32_0 = arith.constant 0 : i32
    %c0_i32_1 = arith.constant 0 : i32
    return %c0_i32, %c0_i32_0 : i32, i32
  }
  func.func @transform_7(%arg0: i32) -> (i32, i32) {
    %c0_i32 = arith.constant 0 : i32
    %c0_i32_0 = arith.constant 0 : i32
    return %arg0, %c0_i32 : i32, i32
  }
}

module attributes {stable_mosaic.version = 11 : i64} {
  func.func @kernel(%arg0: i32, %arg1: memref<128x16xf32, #tpu.memory_space<vmem>>, %arg2: memref<16x128xf32, #tpu.memory_space<vmem>>, %arg3: memref<1x128xf32, #tpu.memory_space<vmem>>, %arg4: memref<128x128xf32, #tpu.memory_space<vmem>>, %arg5: memref<1x128xf32, #tpu.memory_space<vmem>>, %arg6: memref<128x128xf32, #tpu.memory_space<vmem>>, %arg7: memref<1x128xf32, #tpu.memory_space<vmem>>, %arg8: memref<8x128xf32, #tpu.memory_space<vmem>>) attributes {dimension_semantics = [#tpu.dimension_semantics<parallel>], iteration_bounds = array<i64: 1>, scalar_prefetch = 0 : i64, scratch_operands = 0 : i64, tpu.core_type = #tpu.core_type<tc>, window_params = [{transform_indices = @transform_0, window_bounds = array<i64: 128, 16>}, {pipeline_mode = #tpu.pipeline_mode<synchronous>, transform_indices = @transform_1, window_bounds = array<i64: 16, 128>}, {pipeline_mode = #tpu.pipeline_mode<synchronous>, transform_indices = @transform_2, window_bounds = array<i64: 1, 128>}, {pipeline_mode = #tpu.pipeline_mode<synchronous>, transform_indices = @transform_3, window_bounds = array<i64: 128, 128>}, {pipeline_mode = #tpu.pipeline_mode<synchronous>, transform_indices = @transform_4, window_bounds = array<i64: 1, 128>}, {pipeline_mode = #tpu.pipeline_mode<synchronous>, transform_indices = @transform_5, window_bounds = array<i64: 128, 128>}, {pipeline_mode = #tpu.pipeline_mode<synchronous>, transform_indices = @transform_6, window_bounds = array<i64: 1, 128>}, {transform_indices = @transform_7, window_bounds = array<i64: 8, 128>}]} {
    %c0 = arith.constant 0 : index
    %c0_0 = arith.constant 0 : index
    %0 = vector.load %arg1[%c0, %c0_0] : memref<128x16xf32, #tpu.memory_space<vmem>>, vector<128x16xf32>
    %c0_1 = arith.constant 0 : index
    %c0_2 = arith.constant 0 : index
    %1 = vector.load %arg2[%c0_1, %c0_2] : memref<16x128xf32, #tpu.memory_space<vmem>>, vector<16x128xf32>
    %cst = arith.constant dense<0.000000e+00> : vector<128x128xf32>
    %2 = tpu.matmul %0, %1, %cst {dimension_numbers = #tpu.dot_dimension_numbers<[1], [0], [0], [1], [0, 0, 1, 1], [], []>} : vector<128x16xf32>, vector<16x128xf32>, vector<128x128xf32> -> vector<128x128xf32>
    %c0_3 = arith.constant 0 : index
    %c0_4 = arith.constant 0 : index
    %3 = vector.load %arg3[%c0_3, %c0_4] : memref<1x128xf32, #tpu.memory_space<vmem>>, vector<1x128xf32>
    %4 = vector.broadcast %3 : vector<1x128xf32> to vector<128x128xf32>
    %5 = arith.addf %2, %4 : vector<128x128xf32>
    %cst_5 = arith.constant 0.000000e+00 : f32
    %6 = vector.broadcast %cst_5 : f32 to vector<128x128xf32>
    %7 = arith.maximumf %5, %6 : vector<128x128xf32>
    %8 = vector.shape_cast %7 : vector<128x128xf32> to vector<8x16x128xf32>
    %9 = vector.extract_strided_slice %8 {offsets = [0, 0, 0], sizes = [8, 15, 128], strides = [1, 1, 1]} : vector<8x16x128xf32> to vector<8x15x128xf32>
    %cst_6 = arith.constant dense<0xFF800000> : vector<8x128xf32>
    %10 = vector.multi_reduction <maximumf>, %9, %cst_6 [1] : vector<8x15x128xf32> to vector<8x128xf32>
    %c0_7 = arith.constant 0 : index
    %c0_8 = arith.constant 0 : index
    %11 = vector.load %arg4[%c0_7, %c0_8] : memref<128x128xf32, #tpu.memory_space<vmem>>, vector<128x128xf32>
    %cst_9 = arith.constant dense<0.000000e+00> : vector<8x128xf32>
    %12 = tpu.matmul %10, %11, %cst_9 {dimension_numbers = #tpu.dot_dimension_numbers<[1], [0], [0], [1], [0, 0, 1, 1], [], []>} : vector<8x128xf32>, vector<128x128xf32>, vector<8x128xf32> -> vector<8x128xf32>
    %c0_10 = arith.constant 0 : index
    %c0_11 = arith.constant 0 : index
    %13 = vector.load %arg5[%c0_10, %c0_11] : memref<1x128xf32, #tpu.memory_space<vmem>>, vector<1x128xf32>
    %14 = vector.broadcast %13 : vector<1x128xf32> to vector<8x128xf32>
    %15 = arith.addf %12, %14 : vector<8x128xf32>
    %cst_12 = arith.constant 0.000000e+00 : f32
    %16 = vector.broadcast %cst_12 : f32 to vector<8x128xf32>
    %17 = arith.maximumf %15, %16 : vector<8x128xf32>
    %c0_13 = arith.constant 0 : index
    %c0_14 = arith.constant 0 : index
    %18 = vector.load %arg6[%c0_13, %c0_14] : memref<128x128xf32, #tpu.memory_space<vmem>>, vector<128x128xf32>
    %cst_15 = arith.constant dense<0.000000e+00> : vector<8x128xf32>
    %19 = tpu.matmul %17, %18, %cst_15 {dimension_numbers = #tpu.dot_dimension_numbers<[1], [0], [0], [1], [0, 0, 1, 1], [], []>} : vector<8x128xf32>, vector<128x128xf32>, vector<8x128xf32> -> vector<8x128xf32>
    %c0_16 = arith.constant 0 : index
    %c0_17 = arith.constant 0 : index
    %20 = vector.load %arg7[%c0_16, %c0_17] : memref<1x128xf32, #tpu.memory_space<vmem>>, vector<1x128xf32>
    %21 = vector.broadcast %20 : vector<1x128xf32> to vector<8x128xf32>
    %22 = arith.addf %19, %21 : vector<8x128xf32>
    %cst_18 = arith.constant 0.000000e+00 : f32
    %23 = vector.broadcast %cst_18 : f32 to vector<8x128xf32>
    %24 = arith.maximumf %22, %23 : vector<8x128xf32>
    %c0_19 = arith.constant 0 : index
    %c0_20 = arith.constant 0 : index
    %25 = vector.load %arg8[%c0_19, %c0_20] : memref<8x128xf32, #tpu.memory_space<vmem>>, vector<8x128xf32>
    tpu.vector_store %arg8[%c0_19, %c0_20], %24 {strides = array<i32>} : memref<8x128xf32, #tpu.memory_space<vmem>>, vector<8x128xf32>,
    return
  }
  func.func @transform_0(%arg0: i32) -> (i32, i32) {
    %c0_i32 = arith.constant 0 : i32
    %c0_i32_0 = arith.constant 0 : i32
    return %arg0, %c0_i32 : i32, i32
  }
  func.func @transform_1(%arg0: i32) -> (i32, i32) {
    %c0_i32 = arith.constant 0 : i32
    %c0_i32_0 = arith.constant 0 : i32
    %c0_i32_1 = arith.constant 0 : i32
    return %c0_i32, %c0_i32_0 : i32, i32
  }
  func.func @transform_2(%arg0: i32) -> (i32, i32) {
    %c0_i32 = arith.constant 0 : i32
    %c0_i32_0 = arith.constant 0 : i32
    %c0_i32_1 = arith.constant 0 : i32
    return %c0_i32, %c0_i32_0 : i32, i32
  }
  func.func @transform_3(%arg0: i32) -> (i32, i32) {
    %c0_i32 = arith.constant 0 : i32
    %c0_i32_0 = arith.constant 0 : i32
    %c0_i32_1 = arith.constant 0 : i32
    return %c0_i32, %c0_i32_0 : i32, i32
  }
  func.func @transform_4(%arg0: i32) -> (i32, i32) {
    %c0_i32 = arith.constant 0 : i32
    %c0_i32_0 = arith.constant 0 : i32
    %c0_i32_1 = arith.constant 0 : i32
    return %c0_i32, %c0_i32_0 : i32, i32
  }
  func.func @transform_5(%arg0: i32) -> (i32, i32) {
    %c0_i32 = arith.constant 0 : i32
    %c0_i32_0 = arith.constant 0 : i32
    %c0_i32_1 = arith.constant 0 : i32
    return %c0_i32, %c0_i32_0 : i32, i32
  }
  func.func @transform_6(%arg0: i32) -> (i32, i32) {
    %c0_i32 = arith.constant 0 : i32
    %c0_i32_0 = arith.constant 0 : i32
    %c0_i32_1 = arith.constant 0 : i32
    return %c0_i32, %c0_i32_0 : i32, i32
  }
  func.func @transform_7(%arg0: i32) -> (i32, i32) {
    %c0_i32 = arith.constant 0 : i32
    %c0_i32_0 = arith.constant 0 : i32
    return %arg0, %c0_i32 : i32, i32
  }
}

</mosaic_0001>

<bundles_post_ra>
// kernel: tpu_custom_call.1
= control target key start
LH: loop header
LB: loop body
LE: loop exit
PB: predicated region body
PF: predicated region fallthrough
CT: control target
= control target key end

     0   :  { %12 = vsyncpa [#allocation3], 0  ;;  %s1084_s0 = inlined_call_operand.vmem [shape: f32[128,16], index: 0, kind: input, shape index: {}]   ;;  %s1085_s1 = inlined_call_operand.vmem [shape: f32[16,128], index: 1, kind: input, shape index: {}]   ;;  %s1086_s2 = inlined_call_operand.vmem [shape: f32[1,128], index: 2, kind: input, shape index: {}]   ;;  %s1087_s3 = inlined_call_operand.vmem [shape: f32[128,128], index: 3, kind: input, shape index: {}]   ;;  %s1088_s4 = inlined_call_operand.vmem [shape: f32[1,128], index: 4, kind: input, shape index: {}]   ;;  %s1089_s5 = inlined_call_operand.hbm [shape: f32[128,128], index: 5, kind: input, shape index: {}]   ;;  %s1090_s6 = inlined_call_operand.vmem [shape: f32[1,128], index: 6, kind: input, shape index: {}]   ;;  %s1091_s7 = inlined_call_operand.hbm [shape: f32[8,128], index: 7, kind: output, shape index: {}]  }
   0x1   :  { %13 = vsyncpa [#allocation4], 0  ;;  %s844_s24 = smov [#allocation2]   ;;  %s796_s28 = scalar_lea.hbm %s1089_s5, 2048 }
   0x2   :  { %s29_s25 = sshll.u32 %s844_s24, 4  ;;  %p797_p0 = scmp.ne.s32.totalorder %s1089_s5, %s796_s28  ;;  %s30_s25 = int_to_ptr.vmem [resolvable:$true] %s29_s25 }
   0x3   :  { %p800_p1 = scmp.lt.u32.totalorder %s796_s28, %s1089_s5 }
   0x5   :  { %p802_p2 = pnand %p800_p1, %p797_p0 }
   0x7   :  { %805 = shalt.err (!%p802_p2)
}
   0x8   :  { %s806_s10 = scalar_lea.vmem %s30_s25, 2048  ;;  %p811_p4 = scmp.lt.s32.totalorder %s30_s25, %s30_s25 }
   0x9   :  { %p807_p3 = scmp.ne.s32.totalorder %s30_s25, %s806_s10  ;;  %p812_p5 = scmp.lt.s32.totalorder %s806_s10, %s806_s10 }
   0xb   :  { %p813_p6 = por %p812_p5, %p811_p4 }
   0xd   :  { %p814_p7 = pnand %p813_p6, %p807_p3 }
   0xf   :  { %817 = shalt.err (!%p814_p7)
}
  0x10   :  { %s845_s11 = smov 128   ;;  %s846_s12 = smov 8  }
  0x11   :  { %35 = dma.hbm_to_vmem [thread:$0]  %s1089_s5, 2048, %s30_s25, [#allocation3], %s845_s11, %s845_s11, %s846_s12  }
  0x12   :  { %840 = dma.done.wait [#allocation3], 2048  }
  0x13   :  { %841 = vsyncadd [#allocation3], 4294965248  ;;  %vm66_vm0 = vcmask 130048   ;;  %v57_v0 = vld [vmem:[%s1085_s1] sm:$0xff]  ;;  %v58_v1 = vld [vmem:[%s1085_s1 + $0x8] sm:$0xff]  ;;  %v847_v22 = vmov 0.0|0.0  }
  0x14   :  { %v41_v2 = vld [vmem:[%s1084_s0] sm:$0xff]  ;;  %v737_v3 = vpack.c.bf16 %v58_v1, %v57_v0  ;;  %v42_v4 = vld [vmem:[%s1084_s0 + $0x8] sm:$0xff]  ;;  %v43_v5 = vld [vmem:[%s1084_s0 + $0x10] sm:$0xff]  ;;  %741 = vmatprep.subr.bf16.mxu1 %v847_v22  ;;  %vm848_vm1 = vmmov 0   ;;  %v849_v44 = vmov 0.0   ;;  %vm276_vm2 = vcmask 1046528  }
  0x15   :  { %643 = vmatprep.mubr.msk.f32.mxu0 %vm66_vm0, %v41_v2  ;;  %v44_v6 = vld [vmem:[%s1084_s0 + $0x18] sm:$0xff]  ;;  %v45_v7 = vld [vmem:[%s1084_s0 + $0x20] sm:$0xff]  ;;  %v46_v8 = vld [vmem:[%s1084_s0 + $0x28] sm:$0xff]  ;;  %699 = vmatprep.mubr.msk.f32.mxu1 %vm848_vm1, %v849_v44  ;;  %vm372_vm3 = vcmask 1041409   ;;  %vm374_vm4 = vcmask 1042434   ;;  %vm376_vm5 = vcmask 1043459  }
  0x16   :  { %738 = vmatprep.subr.bf16.mxu0 %v737_v3  ;;  %v47_v9 = vld [vmem:[%s1084_s0 + $0x30] sm:$0xff]  ;;  %v48_v10 = vld [vmem:[%s1084_s0 + $0x38] sm:$0xff]  ;;  %v49_v11 = vld [vmem:[%s1084_s0 + $0x40] sm:$0xff]  ;;  %vm378_vm6 = vcmask 1044484   ;;  %vm380_vm7 = vcmask 1045509   ;;  %vm382_vm8 = vcmask 1046534  }
  0x17   :  { %740 = vmatpush3.bf16.msra.mxu0 %v737_v3  ;;  %v50_v12 = vld [vmem:[%s1084_s0 + $0x48] sm:$0xff]  ;;  %v51_v13 = vld [vmem:[%s1084_s0 + $0x50] sm:$0xff]  ;;  %v52_v14 = vld [vmem:[%s1084_s0 + $0x58] sm:$0xff]  ;;  %vm384_vm9 = vcmask 1047559   ;;  %s850_s10 = smov [#allocation5]  }
  0x18   :  { %v53_v15 = vld [vmem:[%s1084_s0 + $0x60] sm:$0xff]  ;;  %v54_v16 = vld [vmem:[%s1084_s0 + $0x68] sm:$0xff]  ;;  %v55_v17 = vld [vmem:[%s1084_s0 + $0x70] sm:$0xff]  ;;  %765 = vmatprep.subr.bf16.mxu0 %v847_v22  ;;  %s559_s11 = sshll.u32 %s850_s10, 4  ;;  %s560_s11 = int_to_ptr.vmem [resolvable:$true] %s559_s11 }
  0x19   :  { %v56_v18 = vld [vmem:[%s1084_s0 + $0x78] sm:$0xff]  ;;  %v341_v19 = vld [vmem:[%s1087_s3] sm:$0xff]  ;;  %v342_v20 = vld [vmem:[%s1087_s3 + $0x8] sm:$0xff]  ;;  %s818_s12 = scalar_lea.vmem %s560_s11, 128  ;;  %p823_p9 = scmp.lt.s32.totalorder %s560_s11, %s560_s11 }
  0x1a   :  { %644 = vmatmul.mubr.msk.f32.vlgmr.msra.gmra.mrb[0].mxu0 %vm66_vm0, %v42_v4  ;;  %v742_v21 = vpack.c.bf16 %v342_v20, %v341_v19  ;;  %v343_v23 = vld [vmem:[%s1087_s3 + $0x10] sm:$0xff]  ;;  %v344_v24 = vld [vmem:[%s1087_s3 + $0x18] sm:$0xff]  ;;  %v345_v26 = vld [vmem:[%s1087_s3 + $0x20] sm:$0xff]  ;;  %p819_p8 = scmp.ne.s32.totalorder %s560_s11, %s818_s12  ;;  %p824_p10 = scmp.lt.s32.totalorder %s818_s12, %s818_s12 }
  0x1b   :  { %646 = vmatprep.mubr.msk.f32.mxu0 %vm66_vm0, %v43_v5  ;;  %v745_v25 = vpack.c.bf16 %v344_v24, %v343_v23  ;;  %v346_v27 = vld [vmem:[%s1087_s3 + $0x28] sm:$0xff]  ;;  %v347_v29 = vld [vmem:[%s1087_s3 + $0x30] sm:$0xff]  ;;  %v348_v30 = vld [vmem:[%s1087_s3 + $0x38] sm:$0xff] }
  0x1c   :  { %743 = vmatpush3.bf16.msra.mxu1 %v742_v21  ;;  %v748_v28 = vpack.c.bf16 %v346_v27, %v345_v26  ;;  %v751_v31 = vpack.c.bf16 %v348_v30, %v347_v29  ;;  %v349_v32 = vld [vmem:[%s1087_s3 + $0x40] sm:$0xff]  ;;  %v350_v33 = vld [vmem:[%s1087_s3 + $0x48] sm:$0xff]  ;;  %v351_v35 = vld [vmem:[%s1087_s3 + $0x50] sm:$0xff]  ;;  %p825_p11 = por %p824_p10, %p823_p9 }
  0x1d   :  { %744 = vmatprep.subr.bf16.mxu1 %v847_v22  ;;  %v754_v34 = vpack.c.bf16 %v350_v33, %v349_v32  ;;  %v352_v36 = vld [vmem:[%s1087_s3 + $0x58] sm:$0xff]  ;;  %v353_v38 = vld [vmem:[%s1087_s3 + $0x60] sm:$0xff]  ;;  %v354_v39 = vld [vmem:[%s1087_s3 + $0x68] sm:$0xff] }
  0x1e   :  { %647 = vmatmul.mubr.msk.f32.gmra.mrb[2].mxu0 %vm66_vm0, %v44_v6  ;;  %v757_v37 = vpack.c.bf16 %v352_v36, %v351_v35  ;;  %v760_v40 = vpack.c.bf16 %v354_v39, %v353_v38  ;;  %v355_v41 = vld [vmem:[%s1087_s3 + $0x70] sm:$0xff]  ;;  %v356_v42 = vld [vmem:[%s1087_s3 + $0x78] sm:$0xff]  ;;  %v458_v45 = vld [vmem:[#allocation2] sm:$0xff]  ;;  %p826_p12 = pnand %p825_p11, %p819_p8 }
  0x1f   :  { %649 = vmatprep.mubr.msk.f32.mxu0 %vm66_vm0, %v45_v7  ;;  %v763_v43 = vpack.c.bf16 %v356_v42, %v355_v41  ;;  %v459_v46 = vld [vmem:[#allocation2 + $0x8] sm:$0xff]  ;;  %v460_v47 = vld [vmem:[#allocation2 + $0x10] sm:$0xff]  ;;  %v461_v49 = vld [vmem:[#allocation2 + $0x18] sm:$0xff] }
  0x20   :  { %746 = vmatpush3.bf16.msra.mxu1 %v745_v25  ;;  %v766_v48 = vpack.c.bf16 %v459_v46, %v458_v45  ;;  %v769_v50 = vpack.c.bf16 %v461_v49, %v460_v47  ;;  %v462_v51 = vld [vmem:[#allocation2 + $0x20] sm:$0xff]  ;;  %v463_v52 = vld [vmem:[#allocation2 + $0x28] sm:$0xff]  ;;  %v464_v54 = vld [vmem:[#allocation2 + $0x30] sm:$0xff] }
  0x21   :  { %747 = vmatprep.subr.bf16.mxu1 %v847_v22  ;;  %v772_v53 = vpack.c.bf16 %v463_v52, %v462_v51  ;;  %v465_v55 = vld [vmem:[#allocation2 + $0x38] sm:$0xff]  ;;  %v466_v57 = vld [vmem:[#allocation2 + $0x40] sm:$0xff]  ;;  %v467_v58 = vld [vmem:[#allocation2 + $0x48] sm:$0xff] }
  0x22   :  { %650 = vmatmul.mubr.msk.f32.gmra.mrb[4].mxu0 %vm66_vm0, %v46_v8  ;;  %v775_v56 = vpack.c.bf16 %v465_v55, %v464_v54  ;;  %v778_v59 = vpack.c.bf16 %v467_v58, %v466_v57  ;;  %v468_v60 = vld [vmem:[#allocation2 + $0x50] sm:$0xff]  ;;  %v469_v61 = vld [vmem:[#allocation2 + $0x58] sm:$0xff]  ;;  %v470_v63 = vld [vmem:[#allocation2 + $0x60] sm:$0xff] }
  0x23   :  { %652 = vmatprep.mubr.msk.f32.mxu0 %vm66_vm0, %v47_v9  ;;  %767 = vmatpush3.bf16.msra.mxu0 %v766_v48  ;;  %v781_v62 = vpack.c.bf16 %v469_v61, %v468_v60  ;;  %v471_v0 = vld [vmem:[#allocation2 + $0x68] sm:$0xff]  ;;  %v1040_v2 = vld [vmem:[%s1086_s2] ss:$0 sm:$0xff] }
  0x24   :  { %749 = vmatpush3.bf16.msra.mxu1 %v748_v28  ;;  %768 = vmatprep.subr.bf16.mxu0 %v847_v22  ;;  %v784_v1 = vpack.c.bf16 %v471_v0, %v470_v63 }
  0x25   :  { %750 = vmatprep.subr.bf16.mxu1 %v847_v22 }
  0x26   :  { %653 = vmatmul.mubr.msk.f32.gmra.mrb[6].mxu0 %vm66_vm0, %v48_v10 }
  0x27   :  { %655 = vmatprep.mubr.msk.f32.mxu0 %vm66_vm0, %v49_v11  ;;  %770 = vmatpush3.bf16.msra.mxu0 %v769_v50 }
  0x28   :  { %752 = vmatpush3.bf16.msra.mxu1 %v751_v31  ;;  %771 = vmatprep.subr.bf16.mxu0 %v847_v22 }
  0x29   :  { %753 = vmatprep.subr.bf16.mxu1 %v847_v22 }
  0x2a   :  { %656 = vmatmul.mubr.msk.f32.gmra.mrb[8].mxu0 %vm66_vm0, %v50_v12 }
  0x2b   :  { %658 = vmatprep.mubr.msk.f32.mxu0 %vm66_vm0, %v51_v13  ;;  %773 = vmatpush3.bf16.msra.mxu0 %v772_v53 }
  0x2c   :  { %755 = vmatpush3.bf16.msra.mxu1 %v754_v34  ;;  %774 = vmatprep.subr.bf16.mxu0 %v847_v22 }
  0x2d   :  { %756 = vmatprep.subr.bf16.mxu1 %v847_v22 }
  0x2e   :  { %659 = vmatmul.mubr.msk.f32.gmra.mrb[10].mxu0 %vm66_vm0, %v52_v14 }
  0x2f   :  { %661 = vmatprep.mubr.msk.f32.mxu0 %vm66_vm0, %v53_v15  ;;  %776 = vmatpush3.bf16.msra.mxu0 %v775_v56 }
  0x30   :  { %758 = vmatpush3.bf16.msra.mxu1 %v757_v37  ;;  %777 = vmatprep.subr.bf16.mxu0 %v847_v22 }
  0x31   :  { %759 = vmatprep.subr.bf16.mxu1 %v847_v22 }
  0x32   :  { %662 = vmatmul.mubr.msk.f32.gmra.mrb[12].mxu0 %vm66_vm0, %v54_v16 }
  0x33   :  { %664 = vmatprep.mubr.msk.f32.mxu0 %vm66_vm0, %v55_v17  ;;  %779 = vmatpush3.bf16.msra.mxu0 %v778_v59 }
  0x34   :  { %761 = vmatpush3.bf16.msra.mxu1 %v760_v40  ;;  %780 = vmatprep.subr.bf16.mxu0 %v847_v22 }
  0x35   :  { %762 = vmatprep.subr.bf16.mxu1 %v847_v22 }
  0x36   :  { %665 = vmatmul.mubr.msk.f32.gmra.mrb[14].mxu0 %vm66_vm0, %v56_v18 }
  0x37   :  { %734 = vmatprep.mubr.msk.f32.mxu0 %vm848_vm1, %v849_v44  ;;  %782 = vmatpush3.bf16.msra.mxu0 %v781_v62 }
  0x38   :  { %764 = vmatpush3.bf16.msra.mxu1 %v763_v43  ;;  %783 = vmatprep.subr.bf16.mxu0 %v847_v22 }
  0x3b   :  { %785 = vmatpush3.bf16.msra.mxu0 %v784_v1 }
  0x3c   :  { %786 = vmatprep.subr.bf16.mxu0 %v847_v22 }
  0xed   :  { %v645_v3 = vpop.f32.mrb[0].mxu0 }
  0xee   :  { %v187_v4 = vadd.f32 %v645_v3, %v1040_v2  ;;  %v181_v5 = vpop.f32.mrb[1].mxu0 }
  0xef   :  { %v182_v6 = vadd.f32 %v1040_v2, %v181_v5 }
  0xf0   :  { %v261_v7 = vmax.f32 %v187_v4, 0.0 }
  0xf1   :  { %v260_v8 = vmax.f32 %v182_v6, 0.0  ;;  %v648_v9 = vpop.f32.mrb[2].mxu0 }
  0xf2   :  { %v277_v10 = vsel %vm276_vm2, %v261_v7, -inf  ;;  %v197_v11 = vadd.f32 %v648_v9, %v1040_v2  ;;  %v191_v12 = vpop.f32.mrb[3].mxu0 }
  0xf3   :  { %v278_v13 = vmax.f32 %v260_v8, %v277_v10  ;;  %v192_v14 = vadd.f32 %v1040_v2, %v191_v12 }
  0xf4   :  { %v263_v15 = vmax.f32 %v197_v11, 0.0 }
  0xf5   :  { %v279_v16 = vrot.slane %v278_v13, 4  ;;  %v262_v17 = vmax.f32 %v192_v14, 0.0  ;;  %v651_v18 = vpop.f32.mrb[4].mxu0 }
  0xf6   :  { %v285_v19 = vsel %vm276_vm2, %v263_v15, -inf  ;;  %v207_v20 = vadd.f32 %v651_v18, %v1040_v2  ;;  %v201_v21 = vpop.f32.mrb[5].mxu0 }
  0xf7   :  { %v280_v22 = vmax.f32 %v278_v13, %v279_v16  ;;  %v286_v23 = vmax.f32 %v262_v17, %v285_v19  ;;  %v202_v24 = vadd.f32 %v1040_v2, %v201_v21 }
  0xf8   :  { %v265_v25 = vmax.f32 %v207_v20, 0.0 }
  0xf9   :  { %v281_v26 = vrot.slane %v280_v22, 2  ;;  %v287_v27 = vrot.slane %v286_v23, 4  ;;  %v264_v28 = vmax.f32 %v202_v24, 0.0  ;;  %v654_v29 = vpop.f32.mrb[6].mxu0 }
  0xfa   :  { %v293_v30 = vsel %vm276_vm2, %v265_v25, -inf  ;;  %v217_v31 = vadd.f32 %v654_v29, %v1040_v2  ;;  %v211_v32 = vpop.f32.mrb[7].mxu0 }
  0xfb   :  { %v282_v33 = vmax.f32 %v280_v22, %v281_v26  ;;  %v288_v34 = vmax.f32 %v286_v23, %v287_v27  ;;  %v294_v35 = vmax.f32 %v264_v28, %v293_v30  ;;  %v212_v36 = vadd.f32 %v1040_v2, %v211_v32 }
  0xfc   :  { %v267_v37 = vmax.f32 %v217_v31, 0.0 }
  0xfd   :  { %v289_v38 = vrot.slane %v288_v34, 2  ;;  %v295_v39 = vrot.slane %v294_v35, 4  ;;  %v266_v40 = vmax.f32 %v212_v36, 0.0  ;;  %v657_v41 = vpop.f32.mrb[8].mxu0  ;;  %v283_v42 = vrot.slane %v282_v33, 1 }
  0xfe   :  { %v301_v43 = vsel %vm276_vm2, %v267_v37, -inf  ;;  %v227_v44 = vadd.f32 %v657_v41, %v1040_v2  ;;  %v221_v45 = vpop.f32.mrb[9].mxu0 }
  0xff   :  { %v290_v46 = vmax.f32 %v288_v34, %v289_v38  ;;  %v296_v47 = vmax.f32 %v294_v35, %v295_v39  ;;  %v302_v48 = vmax.f32 %v266_v40, %v301_v43  ;;  %v222_v50 = vadd.f32 %v1040_v2, %v221_v45 }
 0x100   :  { %v269_v49 = vmax.f32 %v227_v44, 0.0  ;;  %v284_v55 = vmax.f32 %v282_v33, %v283_v42 }
 0x101   :  { %v291_v51 = vrot.slane %v290_v46, 1  ;;  %v297_v52 = vrot.slane %v296_v47, 2  ;;  %v303_v53 = vrot.slane %v302_v48, 4  ;;  %v660_v54 = vpop.f32.mrb[10].mxu0  ;;  %v268_v57 = vmax.f32 %v222_v50, 0.0 }
 0x102   :  { %v309_v56 = vsel %vm276_vm2, %v269_v49, -inf  ;;  %v237_v58 = vadd.f32 %v660_v54, %v1040_v2  ;;  %v231_v59 = vpop.f32.mrb[11].mxu0 }
 0x103   :  { %v292_v60 = vmax.f32 %v290_v46, %v291_v51  ;;  %v298_v61 = vmax.f32 %v296_v47, %v297_v52  ;;  %v304_v62 = vmax.f32 %v302_v48, %v303_v53  ;;  %v232_v63 = vadd.f32 %v1040_v2, %v231_v59  ;;  %v473_v59 = vld [vmem:[#allocation2 + $0x78] sm:$0xff] }
 0x104   :  { %v310_v0 = vmax.f32 %v268_v57, %v309_v56  ;;  %v271_v1 = vmax.f32 %v237_v58, 0.0  ;;  %v472_v58 = vld [vmem:[#allocation2 + $0x70] sm:$0xff] }
 0x105   :  { %v373_v3 = vsel %vm372_vm3, %v292_v60, %v284_v55  ;;  %v299_v4 = vrot.slane %v298_v61, 1  ;;  %v305_v5 = vrot.slane %v304_v62, 2  ;;  %v270_v6 = vmax.f32 %v232_v63, 0.0  ;;  %v663_v7 = vpop.f32.mrb[12].mxu0 }
 0x106   :  { %v311_v8 = vrot.slane %v310_v0, 4  ;;  %v317_v9 = vsel %vm276_vm2, %v271_v1, -inf  ;;  %v247_v10 = vadd.f32 %v663_v7, %v1040_v2  ;;  %v241_v11 = vpop.f32.mrb[13].mxu0  ;;  %v787_v60 = vpack.c.bf16 %v473_v59, %v472_v58 }
 0x107   :  { %v300_v12 = vmax.f32 %v298_v61, %v299_v4  ;;  %v306_v13 = vmax.f32 %v304_v62, %v305_v5  ;;  %v318_v14 = vmax.f32 %v270_v6, %v317_v9  ;;  %v242_v15 = vadd.f32 %v1040_v2, %v241_v11  ;;  %v585_v61 = vld [vmem:[%s1088_s4] ss:$0 sm:$0xff] }
 0x108   :  { %v312_v16 = vmax.f32 %v310_v0, %v311_v8  ;;  %v273_v17 = vmax.f32 %v247_v10, 0.0  ;;  %788 = vmatpush3.bf16.msra.mxu0 %v787_v60 }
 0x109   :  { %v307_v18 = vrot.slane %v306_v13, 1  ;;  %v319_v19 = vrot.slane %v318_v14, 4  ;;  %v272_v20 = vmax.f32 %v242_v15, 0.0  ;;  %v666_v21 = vpop.f32.mrb[14].mxu0  ;;  %v375_v22 = vsel %vm374_vm4, %v300_v12, %v373_v3  ;;  %v586_v3 = vld [vmem:[%s1090_s6] ss:$0 sm:$0xff] }
 0x10a   :  { %v313_v23 = vrot.slane %v312_v16, 2  ;;  %v325_v24 = vsel %vm276_vm2, %v273_v17, -inf  ;;  %v257_v25 = vadd.f32 %v666_v21, %v1040_v2  ;;  %v251_v26 = vpop.f32.mrb[15].mxu0 }
 0x10b   :  { %v308_v27 = vmax.f32 %v306_v13, %v307_v18  ;;  %v320_v28 = vmax.f32 %v318_v14, %v319_v19  ;;  %v326_v29 = vmax.f32 %v272_v20, %v325_v24  ;;  %v252_v30 = vadd.f32 %v1040_v2, %v251_v26 }
 0x10c   :  { %v314_v31 = vmax.f32 %v312_v16, %v313_v23  ;;  %v275_v32 = vmax.f32 %v257_v25, 0.0 }
 0x10d   :  { %v321_v33 = vrot.slane %v320_v28, 2  ;;  %v327_v34 = vrot.slane %v326_v29, 4  ;;  %v274_v35 = vmax.f32 %v252_v30, 0.0  ;;  %v377_v36 = vsel %vm376_vm5, %v308_v27, %v375_v22 }
 0x10e   :  { %v315_v37 = vrot.slane %v314_v31, 1  ;;  %v333_v38 = vsel %vm276_vm2, %v275_v32, -inf }
 0x10f   :  { %v322_v39 = vmax.f32 %v320_v28, %v321_v33  ;;  %v328_v40 = vmax.f32 %v326_v29, %v327_v34  ;;  %v334_v41 = vmax.f32 %v274_v35, %v333_v38 }
 0x110   :  { %v316_v42 = vmax.f32 %v314_v31, %v315_v37 }
 0x111   :  { %v323_v43 = vrot.slane %v322_v39, 1  ;;  %v329_v44 = vrot.slane %v328_v40, 2  ;;  %v335_v45 = vrot.slane %v334_v41, 4 }
 0x112   :  { %v379_v46 = vsel %vm378_vm6, %v316_v42, %v377_v36 }
 0x113   :  { %v324_v2 = vmax.f32 %v322_v39, %v323_v43  ;;  %v330_v47 = vmax.f32 %v328_v40, %v329_v44  ;;  %v336_v48 = vmax.f32 %v334_v41, %v335_v45 }
 0x115   :  { %v331_v49 = vrot.slane %v330_v47, 1  ;;  %v337_v50 = vrot.slane %v336_v48, 2  ;;  %v381_v51 = vsel %vm380_vm7, %v324_v2, %v379_v46 }
 0x117   :  { %v338_v52 = vmax.f32 %v336_v48, %v337_v50  ;;  %v332_v53 = vmax.f32 %v330_v47, %v331_v49 }
 0x119   :  { %v339_v54 = vrot.slane %v338_v52, 1  ;;  %v383_v55 = vsel %vm382_vm8, %v332_v53, %v381_v51 }
 0x11b   :  { %v340_v56 = vmax.f32 %v338_v52, %v339_v54 }
 0x11d   :  { %v385_v57 = vsel %vm384_vm9, %v340_v56, %v383_v55 }
 0x11e   :  { %700 = vmatmul.mubr.f32.vlgmr.msra.gmra.mrb[0].mxu1 %v385_v57 }
 0x1f1   :  { %v453_v62 = vpop.f32.mrb[0].mxu1 }
 0x1f2   :  { %v454_v63 = vadd.f32 %v585_v61, %v453_v62  ;;  %v701_v0 = vpop.f32.mrb[1].mxu1 }
 0x1f4   :  { %v457_v1 = vmax.f32 %v454_v63, 0.0 }
 0x1f6   :  { %735 = vmatmul.mubr.f32.vlgmr.msra.gmra.mrb[16].mxu0 %v457_v1 }
 0x2c9   :  { %v547_v4 = vpop.f32.mrb[16].mxu0 }
 0x2ca   :  { %v548_v5 = vadd.f32 %v586_v3, %v547_v4  ;;  %v736_v6 = vpop.f32.mrb[17].mxu0 }
 0x2cc   :  { %v551_v7 = vmax.f32 %v548_v5, 0.0 }
 0x2ce   :  { %552 = vst [vmem:[#allocation5] sm:$0xff] %v551_v7 }
 0x2cf   :  { %829 = shalt.err (!%p826_p12)
}
 0x2d0   :  { %s830_s14 = scalar_lea.hbm %s1091_s7, 128 }
 0x2d1   :  { %p831_p13 = scmp.ne.s32.totalorder %s1091_s7, %s830_s14  ;;  %p834_p0 = scmp.lt.u32.totalorder %s830_s14, %s1091_s7 }
 0x2d3   :  { %p836_p1 = pnand %p834_p0, %p831_p13 }
 0x2d5   :  { %839 = shalt.err (!%p836_p1)
}
 0x2d6   :  { %562 = dma.vmem_to_hbm [thread:$0]  %s560_s11, 128, %s1091_s7, [#allocation4]  }
 0x2d7   :  { %842 = dma.done.wait [#allocation4], 128  }
 0x2d8   :  { %843 = vsyncadd [#allocation4], 4294967168 }
 0x2d9   :  { %566 = vsyncpa [#allocation3], 1 }
 0x2da   :  { %567 = vsyncpa [#allocation4], 1 }

// kernel: tpu_custom_call.1
= control target key start
LH: loop header
LB: loop body
LE: loop exit
PB: predicated region body
PF: predicated region fallthrough
CT: control target
= control target key end

     0   :  { %12 = vsyncpa [#allocation3], 0  ;;  %s1084_s0 = inlined_call_operand.vmem [shape: f32[128,16], index: 0, kind: input, shape index: {}]   ;;  %s1085_s1 = inlined_call_operand.vmem [shape: f32[16,128], index: 1, kind: input, shape index: {}]   ;;  %s1086_s2 = inlined_call_operand.vmem [shape: f32[1,128], index: 2, kind: input, shape index: {}]   ;;  %s1087_s3 = inlined_call_operand.vmem [shape: f32[128,128], index: 3, kind: input, shape index: {}]   ;;  %s1088_s4 = inlined_call_operand.vmem [shape: f32[1,128], index: 4, kind: input, shape index: {}]   ;;  %s1089_s5 = inlined_call_operand.hbm [shape: f32[128,128], index: 5, kind: input, shape index: {}]   ;;  %s1090_s6 = inlined_call_operand.vmem [shape: f32[1,128], index: 6, kind: input, shape index: {}]   ;;  %s1091_s7 = inlined_call_operand.hbm [shape: f32[8,128], index: 7, kind: output, shape index: {}]  }
   0x1   :  { %13 = vsyncpa [#allocation4], 0  ;;  %s844_s24 = smov [#allocation2]   ;;  %s796_s28 = scalar_lea.hbm %s1089_s5, 2048 }
   0x2   :  { %s29_s25 = sshll.u32 %s844_s24, 4  ;;  %p797_p0 = scmp.ne.s32.totalorder %s1089_s5, %s796_s28  ;;  %s30_s25 = int_to_ptr.vmem [resolvable:$true] %s29_s25 }
   0x3   :  { %p800_p1 = scmp.lt.u32.totalorder %s796_s28, %s1089_s5 }
   0x5   :  { %p802_p2 = pnand %p800_p1, %p797_p0 }
   0x7   :  { %805 = shalt.err (!%p802_p2)
}
   0x8   :  { %s806_s10 = scalar_lea.vmem %s30_s25, 2048  ;;  %p811_p4 = scmp.lt.s32.totalorder %s30_s25, %s30_s25 }
   0x9   :  { %p807_p3 = scmp.ne.s32.totalorder %s30_s25, %s806_s10  ;;  %p812_p5 = scmp.lt.s32.totalorder %s806_s10, %s806_s10 }
   0xb   :  { %p813_p6 = por %p812_p5, %p811_p4 }
   0xd   :  { %p814_p7 = pnand %p813_p6, %p807_p3 }
   0xf   :  { %817 = shalt.err (!%p814_p7)
}
  0x10   :  { %s845_s11 = smov 128   ;;  %s846_s12 = smov 8  }
  0x11   :  { %35 = dma.hbm_to_vmem [thread:$0]  %s1089_s5, 2048, %s30_s25, [#allocation3], %s845_s11, %s845_s11, %s846_s12  }
  0x12   :  { %840 = dma.done.wait [#allocation3], 2048  }
  0x13   :  { %841 = vsyncadd [#allocation3], 4294965248  ;;  %vm66_vm0 = vcmask 130048   ;;  %v57_v0 = vld [vmem:[%s1085_s1] sm:$0xff]  ;;  %v58_v1 = vld [vmem:[%s1085_s1 + $0x8] sm:$0xff]  ;;  %v847_v22 = vmov 0.0|0.0  }
  0x14   :  { %v41_v2 = vld [vmem:[%s1084_s0] sm:$0xff]  ;;  %v737_v3 = vpack.c.bf16 %v58_v1, %v57_v0  ;;  %v42_v4 = vld [vmem:[%s1084_s0 + $0x8] sm:$0xff]  ;;  %v43_v5 = vld [vmem:[%s1084_s0 + $0x10] sm:$0xff]  ;;  %741 = vmatprep.subr.bf16.mxu1 %v847_v22  ;;  %vm848_vm1 = vmmov 0   ;;  %v849_v44 = vmov 0.0   ;;  %vm276_vm2 = vcmask 1046528  }
  0x15   :  { %643 = vmatprep.mubr.msk.f32.mxu0 %vm66_vm0, %v41_v2  ;;  %v44_v6 = vld [vmem:[%s1084_s0 + $0x18] sm:$0xff]  ;;  %v45_v7 = vld [vmem:[%s1084_s0 + $0x20] sm:$0xff]  ;;  %v46_v8 = vld [vmem:[%s1084_s0 + $0x28] sm:$0xff]  ;;  %699 = vmatprep.mubr.msk.f32.mxu1 %vm848_vm1, %v849_v44  ;;  %vm372_vm3 = vcmask 1041409   ;;  %vm374_vm4 = vcmask 1042434   ;;  %vm376_vm5 = vcmask 1043459  }
  0x16   :  { %738 = vmatprep.subr.bf16.mxu0 %v737_v3  ;;  %v47_v9 = vld [vmem:[%s1084_s0 + $0x30] sm:$0xff]  ;;  %v48_v10 = vld [vmem:[%s1084_s0 + $0x38] sm:$0xff]  ;;  %v49_v11 = vld [vmem:[%s1084_s0 + $0x40] sm:$0xff]  ;;  %vm378_vm6 = vcmask 1044484   ;;  %vm380_vm7 = vcmask 1045509   ;;  %vm382_vm8 = vcmask 1046534  }
  0x17   :  { %740 = vmatpush3.bf16.msra.mxu0 %v737_v3  ;;  %v50_v12 = vld [vmem:[%s1084_s0 + $0x48] sm:$0xff]  ;;  %v51_v13 = vld [vmem:[%s1084_s0 + $0x50] sm:$0xff]  ;;  %v52_v14 = vld [vmem:[%s1084_s0 + $0x58] sm:$0xff]  ;;  %vm384_vm9 = vcmask 1047559   ;;  %s850_s10 = smov [#allocation5]  }
  0x18   :  { %v53_v15 = vld [vmem:[%s1084_s0 + $0x60] sm:$0xff]  ;;  %v54_v16 = vld [vmem:[%s1084_s0 + $0x68] sm:$0xff]  ;;  %v55_v17 = vld [vmem:[%s1084_s0 + $0x70] sm:$0xff]  ;;  %765 = vmatprep.subr.bf16.mxu0 %v847_v22  ;;  %s559_s11 = sshll.u32 %s850_s10, 4  ;;  %s560_s11 = int_to_ptr.vmem [resolvable:$true] %s559_s11 }
  0x19   :  { %v56_v18 = vld [vmem:[%s1084_s0 + $0x78] sm:$0xff]  ;;  %v341_v19 = vld [vmem:[%s1087_s3] sm:$0xff]  ;;  %v342_v20 = vld [vmem:[%s1087_s3 + $0x8] sm:$0xff]  ;;  %s818_s12 = scalar_lea.vmem %s560_s11, 128  ;;  %p823_p9 = scmp.lt.s32.totalorder %s560_s11, %s560_s11 }
  0x1a   :  { %644 = vmatmul.mubr.msk.f32.vlgmr.msra.gmra.mrb[0].mxu0 %vm66_vm0, %v42_v4  ;;  %v742_v21 = vpack.c.bf16 %v342_v20, %v341_v19  ;;  %v343_v23 = vld [vmem:[%s1087_s3 + $0x10] sm:$0xff]  ;;  %v344_v24 = vld [vmem:[%s1087_s3 + $0x18] sm:$0xff]  ;;  %v345_v26 = vld [vmem:[%s1087_s3 + $0x20] sm:$0xff]  ;;  %p819_p8 = scmp.ne.s32.totalorder %s560_s11, %s818_s12  ;;  %p824_p10 = scmp.lt.s32.totalorder %s818_s12, %s818_s12 }
  0x1b   :  { %646 = vmatprep.mubr.msk.f32.mxu0 %vm66_vm0, %v43_v5  ;;  %v745_v25 = vpack.c.bf16 %v344_v24, %v343_v23  ;;  %v346_v27 = vld [vmem:[%s1087_s3 + $0x28] sm:$0xff]  ;;  %v347_v29 = vld [vmem:[%s1087_s3 + $0x30] sm:$0xff]  ;;  %v348_v30 = vld [vmem:[%s1087_s3 + $0x38] sm:$0xff] }
  0x1c   :  { %743 = vmatpush3.bf16.msra.mxu1 %v742_v21  ;;  %v748_v28 = vpack.c.bf16 %v346_v27, %v345_v26  ;;  %v751_v31 = vpack.c.bf16 %v348_v30, %v347_v29  ;;  %v349_v32 = vld [vmem:[%s1087_s3 + $0x40] sm:$0xff]  ;;  %v350_v33 = vld [vmem:[%s1087_s3 + $0x48] sm:$0xff]  ;;  %v351_v35 = vld [vmem:[%s1087_s3 + $0x50] sm:$0xff]  ;;  %p825_p11 = por %p824_p10, %p823_p9 }
  0x1d   :  { %744 = vmatprep.subr.bf16.mxu1 %v847_v22  ;;  %v754_v34 = vpack.c.bf16 %v350_v33, %v349_v32  ;;  %v352_v36 = vld [vmem:[%s1087_s3 + $0x58] sm:$0xff]  ;;  %v353_v38 = vld [vmem:[%s1087_s3 + $0x60] sm:$0xff]  ;;  %v354_v39 = vld [vmem:[%s1087_s3 + $0x68] sm:$0xff] }
  0x1e   :  { %647 = vmatmul.mubr.msk.f32.gmra.mrb[2].mxu0 %vm66_vm0, %v44_v6  ;;  %v757_v37 = vpack.c.bf16 %v352_v36, %v351_v35  ;;  %v760_v40 = vpack.c.bf16 %v354_v39, %v353_v38  ;;  %v355_v41 = vld [vmem:[%s1087_s3 + $0x70] sm:$0xff]  ;;  %v356_v42 = vld [vmem:[%s1087_s3 + $0x78] sm:$0xff]  ;;  %v458_v45 = vld [vmem:[#allocation2] sm:$0xff]  ;;  %p826_p12 = pnand %p825_p11, %p819_p8 }
  0x1f   :  { %649 = vmatprep.mubr.msk.f32.mxu0 %vm66_vm0, %v45_v7  ;;  %v763_v43 = vpack.c.bf16 %v356_v42, %v355_v41  ;;  %v459_v46 = vld [vmem:[#allocation2 + $0x8] sm:$0xff]  ;;  %v460_v47 = vld [vmem:[#allocation2 + $0x10] sm:$0xff]  ;;  %v461_v49 = vld [vmem:[#allocation2 + $0x18] sm:$0xff] }
  0x20   :  { %746 = vmatpush3.bf16.msra.mxu1 %v745_v25  ;;  %v766_v48 = vpack.c.bf16 %v459_v46, %v458_v45  ;;  %v769_v50 = vpack.c.bf16 %v461_v49, %v460_v47  ;;  %v462_v51 = vld [vmem:[#allocation2 + $0x20] sm:$0xff]  ;;  %v463_v52 = vld [vmem:[#allocation2 + $0x28] sm:$0xff]  ;;  %v464_v54 = vld [vmem:[#allocation2 + $0x30] sm:$0xff] }
  0x21   :  { %747 = vmatprep.subr.bf16.mxu1 %v847_v22  ;;  %v772_v53 = vpack.c.bf16 %v463_v52, %v462_v51  ;;  %v465_v55 = vld [vmem:[#allocation2 + $0x38] sm:$0xff]  ;;  %v466_v57 = vld [vmem:[#allocation2 + $0x40] sm:$0xff]  ;;  %v467_v58 = vld [vmem:[#allocation2 + $0x48] sm:$0xff] }
  0x22   :  { %650 = vmatmul.mubr.msk.f32.gmra.mrb[4].mxu0 %vm66_vm0, %v46_v8  ;;  %v775_v56 = vpack.c.bf16 %v465_v55, %v464_v54  ;;  %v778_v59 = vpack.c.bf16 %v467_v58, %v466_v57  ;;  %v468_v60 = vld [vmem:[#allocation2 + $0x50] sm:$0xff]  ;;  %v469_v61 = vld [vmem:[#allocation2 + $0x58] sm:$0xff]  ;;  %v470_v63 = vld [vmem:[#allocation2 + $0x60] sm:$0xff] }
  0x23   :  { %652 = vmatprep.mubr.msk.f32.mxu0 %vm66_vm0, %v47_v9  ;;  %767 = vmatpush3.bf16.msra.mxu0 %v766_v48  ;;  %v781_v62 = vpack.c.bf16 %v469_v61, %v468_v60  ;;  %v471_v0 = vld [vmem:[#allocation2 + $0x68] sm:$0xff]  ;;  %v1040_v2 = vld [vmem:[%s1086_s2] ss:$0 sm:$0xff] }
  0x24   :  { %749 = vmatpush3.bf16.msra.mxu1 %v748_v28  ;;  %768 = vmatprep.subr.bf16.mxu0 %v847_v22  ;;  %v784_v1 = vpack.c.bf16 %v471_v0, %v470_v63 }
  0x25   :  { %750 = vmatprep.subr.bf16.mxu1 %v847_v22 }
  0x26   :  { %653 = vmatmul.mubr.msk.f32.gmra.mrb[6].mxu0 %vm66_vm0, %v48_v10 }
  0x27   :  { %655 = vmatprep.mubr.msk.f32.mxu0 %vm66_vm0, %v49_v11  ;;  %770 = vmatpush3.bf16.msra.mxu0 %v769_v50 }
  0x28   :  { %752 = vmatpush3.bf16.msra.mxu1 %v751_v31  ;;  %771 = vmatprep.subr.bf16.mxu0 %v847_v22 }
  0x29   :  { %753 = vmatprep.subr.bf16.mxu1 %v847_v22 }
  0x2a   :  { %656 = vmatmul.mubr.msk.f32.gmra.mrb[8].mxu0 %vm66_vm0, %v50_v12 }
  0x2b   :  { %658 = vmatprep.mubr.msk.f32.mxu0 %vm66_vm0, %v51_v13  ;;  %773 = vmatpush3.bf16.msra.mxu0 %v772_v53 }
  0x2c   :  { %755 = vmatpush3.bf16.msra.mxu1 %v754_v34  ;;  %774 = vmatprep.subr.bf16.mxu0 %v847_v22 }
  0x2d   :  { %756 = vmatprep.subr.bf16.mxu1 %v847_v22 }
  0x2e   :  { %659 = vmatmul.mubr.msk.f32.gmra.mrb[10].mxu0 %vm66_vm0, %v52_v14 }
  0x2f   :  { %661 = vmatprep.mubr.msk.f32.mxu0 %vm66_vm0, %v53_v15  ;;  %776 = vmatpush3.bf16.msra.mxu0 %v775_v56 }
  0x30   :  { %758 = vmatpush3.bf16.msra.mxu1 %v757_v37  ;;  %777 = vmatprep.subr.bf16.mxu0 %v847_v22 }
  0x31   :  { %759 = vmatprep.subr.bf16.mxu1 %v847_v22 }
  0x32   :  { %662 = vmatmul.mubr.msk.f32.gmra.mrb[12].mxu0 %vm66_vm0, %v54_v16 }
  0x33   :  { %664 = vmatprep.mubr.msk.f32.mxu0 %vm66_vm0, %v55_v17  ;;  %779 = vmatpush3.bf16.msra.mxu0 %v778_v59 }
  0x34   :  { %761 = vmatpush3.bf16.msra.mxu1 %v760_v40  ;;  %780 = vmatprep.subr.bf16.mxu0 %v847_v22 }
  0x35   :  { %762 = vmatprep.subr.bf16.mxu1 %v847_v22 }
  0x36   :  { %665 = vmatmul.mubr.msk.f32.gmra.mrb[14].mxu0 %vm66_vm0, %v56_v18 }
  0x37   :  { %734 = vmatprep.mubr.msk.f32.mxu0 %vm848_vm1, %v849_v44  ;;  %782 = vmatpush3.bf16.msra.mxu0 %v781_v62 }
  0x38   :  { %764 = vmatpush3.bf16.msra.mxu1 %v763_v43  ;;  %783 = vmatprep.subr.bf16.mxu0 %v847_v22 }
  0x3b   :  { %785 = vmatpush3.bf16.msra.mxu0 %v784_v1 }
  0x3c   :  { %786 = vmatprep.subr.bf16.mxu0 %v847_v22 }
  0xed   :  { %v645_v3 = vpop.f32.mrb[0].mxu0 }
  0xee   :  { %v187_v4 = vadd.f32 %v645_v3, %v1040_v2  ;;  %v181_v5 = vpop.f32.mrb[1].mxu0 }
  0xef   :  { %v182_v6 = vadd.f32 %v1040_v2, %v181_v5 }
  0xf0   :  { %v261_v7 = vmax.f32 %v187_v4, 0.0 }
  0xf1   :  { %v260_v8 = vmax.f32 %v182_v6, 0.0  ;;  %v648_v9 = vpop.f32.mrb[2].mxu0 }
  0xf2   :  { %v277_v10 = vsel %vm276_vm2, %v261_v7, -inf  ;;  %v197_v11 = vadd.f32 %v648_v9, %v1040_v2  ;;  %v191_v12 = vpop.f32.mrb[3].mxu0 }
  0xf3   :  { %v278_v13 = vmax.f32 %v260_v8, %v277_v10  ;;  %v192_v14 = vadd.f32 %v1040_v2, %v191_v12 }
  0xf4   :  { %v263_v15 = vmax.f32 %v197_v11, 0.0 }
  0xf5   :  { %v279_v16 = vrot.slane %v278_v13, 4  ;;  %v262_v17 = vmax.f32 %v192_v14, 0.0  ;;  %v651_v18 = vpop.f32.mrb[4].mxu0 }
  0xf6   :  { %v285_v19 = vsel %vm276_vm2, %v263_v15, -inf  ;;  %v207_v20 = vadd.f32 %v651_v18, %v1040_v2  ;;  %v201_v21 = vpop.f32.mrb[5].mxu0 }
  0xf7   :  { %v280_v22 = vmax.f32 %v278_v13, %v279_v16  ;;  %v286_v23 = vmax.f32 %v262_v17, %v285_v19  ;;  %v202_v24 = vadd.f32 %v1040_v2, %v201_v21 }
  0xf8   :  { %v265_v25 = vmax.f32 %v207_v20, 0.0 }
  0xf9   :  { %v281_v26 = vrot.slane %v280_v22, 2  ;;  %v287_v27 = vrot.slane %v286_v23, 4  ;;  %v264_v28 = vmax.f32 %v202_v24, 0.0  ;;  %v654_v29 = vpop.f32.mrb[6].mxu0 }
  0xfa   :  { %v293_v30 = vsel %vm276_vm2, %v265_v25, -inf  ;;  %v217_v31 = vadd.f32 %v654_v29, %v1040_v2  ;;  %v211_v32 = vpop.f32.mrb[7].mxu0 }
  0xfb   :  { %v282_v33 = vmax.f32 %v280_v22, %v281_v26  ;;  %v288_v34 = vmax.f32 %v286_v23, %v287_v27  ;;  %v294_v35 = vmax.f32 %v264_v28, %v293_v30  ;;  %v212_v36 = vadd.f32 %v1040_v2, %v211_v32 }
  0xfc   :  { %v267_v37 = vmax.f32 %v217_v31, 0.0 }
  0xfd   :  { %v289_v38 = vrot.slane %v288_v34, 2  ;;  %v295_v39 = vrot.slane %v294_v35, 4  ;;  %v266_v40 = vmax.f32 %v212_v36, 0.0  ;;  %v657_v41 = vpop.f32.mrb[8].mxu0  ;;  %v283_v42 = vrot.slane %v282_v33, 1 }
  0xfe   :  { %v301_v43 = vsel %vm276_vm2, %v267_v37, -inf  ;;  %v227_v44 = vadd.f32 %v657_v41, %v1040_v2  ;;  %v221_v45 = vpop.f32.mrb[9].mxu0 }
  0xff   :  { %v290_v46 = vmax.f32 %v288_v34, %v289_v38  ;;  %v296_v47 = vmax.f32 %v294_v35, %v295_v39  ;;  %v302_v48 = vmax.f32 %v266_v40, %v301_v43  ;;  %v222_v50 = vadd.f32 %v1040_v2, %v221_v45 }
 0x100   :  { %v269_v49 = vmax.f32 %v227_v44, 0.0  ;;  %v284_v55 = vmax.f32 %v282_v33, %v283_v42 }
 0x101   :  { %v291_v51 = vrot.slane %v290_v46, 1  ;;  %v297_v52 = vrot.slane %v296_v47, 2  ;;  %v303_v53 = vrot.slane %v302_v48, 4  ;;  %v660_v54 = vpop.f32.mrb[10].mxu0  ;;  %v268_v57 = vmax.f32 %v222_v50, 0.0 }
 0x102   :  { %v309_v56 = vsel %vm276_vm2, %v269_v49, -inf  ;;  %v237_v58 = vadd.f32 %v660_v54, %v1040_v2  ;;  %v231_v59 = vpop.f32.mrb[11].mxu0 }
 0x103   :  { %v292_v60 = vmax.f32 %v290_v46, %v291_v51  ;;  %v298_v61 = vmax.f32 %v296_v47, %v297_v52  ;;  %v304_v62 = vmax.f32 %v302_v48, %v303_v53  ;;  %v232_v63 = vadd.f32 %v1040_v2, %v231_v59  ;;  %v473_v59 = vld [vmem:[#allocation2 + $0x78] sm:$0xff] }
 0x104   :  { %v310_v0 = vmax.f32 %v268_v57, %v309_v56  ;;  %v271_v1 = vmax.f32 %v237_v58, 0.0  ;;  %v472_v58 = vld [vmem:[#allocation2 + $0x70] sm:$0xff] }
 0x105   :  { %v373_v3 = vsel %vm372_vm3, %v292_v60, %v284_v55  ;;  %v299_v4 = vrot.slane %v298_v61, 1  ;;  %v305_v5 = vrot.slane %v304_v62, 2  ;;  %v270_v6 = vmax.f32 %v232_v63, 0.0  ;;  %v663_v7 = vpop.f32.mrb[12].mxu0 }
 0x106   :  { %v311_v8 = vrot.slane %v310_v0, 4  ;;  %v317_v9 = vsel %vm276_vm2, %v271_v1, -inf  ;;  %v247_v10 = vadd.f32 %v663_v7, %v1040_v2  ;;  %v241_v11 = vpop.f32.mrb[13].mxu0  ;;  %v787_v60 = vpack.c.bf16 %v473_v59, %v472_v58 }
 0x107   :  { %v300_v12 = vmax.f32 %v298_v61, %v299_v4  ;;  %v306_v13 = vmax.f32 %v304_v62, %v305_v5  ;;  %v318_v14 = vmax.f32 %v270_v6, %v317_v9  ;;  %v242_v15 = vadd.f32 %v1040_v2, %v241_v11  ;;  %v585_v61 = vld [vmem:[%s1088_s4] ss:$0 sm:$0xff] }
 0x108   :  { %v312_v16 = vmax.f32 %v310_v0, %v311_v8  ;;  %v273_v17 = vmax.f32 %v247_v10, 0.0  ;;  %788 = vmatpush3.bf16.msra.mxu0 %v787_v60 }
 0x109   :  { %v307_v18 = vrot.slane %v306_v13, 1  ;;  %v319_v19 = vrot.slane %v318_v14, 4  ;;  %v272_v20 = vmax.f32 %v242_v15, 0.0  ;;  %v666_v21 = vpop.f32.mrb[14].mxu0  ;;  %v375_v22 = vsel %vm374_vm4, %v300_v12, %v373_v3  ;;  %v586_v3 = vld [vmem:[%s1090_s6] ss:$0 sm:$0xff] }
 0x10a   :  { %v313_v23 = vrot.slane %v312_v16, 2  ;;  %v325_v24 = vsel %vm276_vm2, %v273_v17, -inf  ;;  %v257_v25 = vadd.f32 %v666_v21, %v1040_v2  ;;  %v251_v26 = vpop.f32.mrb[15].mxu0 }
 0x10b   :  { %v308_v27 = vmax.f32 %v306_v13, %v307_v18  ;;  %v320_v28 = vmax.f32 %v318_v14, %v319_v19  ;;  %v326_v29 = vmax.f32 %v272_v20, %v325_v24  ;;  %v252_v30 = vadd.f32 %v1040_v2, %v251_v26 }
 0x10c   :  { %v314_v31 = vmax.f32 %v312_v16, %v313_v23  ;;  %v275_v32 = vmax.f32 %v257_v25, 0.0 }
 0x10d   :  { %v321_v33 = vrot.slane %v320_v28, 2  ;;  %v327_v34 = vrot.slane %v326_v29, 4  ;;  %v274_v35 = vmax.f32 %v252_v30, 0.0  ;;  %v377_v36 = vsel %vm376_vm5, %v308_v27, %v375_v22 }
 0x10e   :  { %v315_v37 = vrot.slane %v314_v31, 1  ;;  %v333_v38 = vsel %vm276_vm2, %v275_v32, -inf }
 0x10f   :  { %v322_v39 = vmax.f32 %v320_v28, %v321_v33  ;;  %v328_v40 = vmax.f32 %v326_v29, %v327_v34  ;;  %v334_v41 = vmax.f32 %v274_v35, %v333_v38 }
 0x110   :  { %v316_v42 = vmax.f32 %v314_v31, %v315_v37 }
 0x111   :  { %v323_v43 = vrot.slane %v322_v39, 1  ;;  %v329_v44 = vrot.slane %v328_v40, 2  ;;  %v335_v45 = vrot.slane %v334_v41, 4 }
 0x112   :  { %v379_v46 = vsel %vm378_vm6, %v316_v42, %v377_v36 }
 0x113   :  { %v324_v2 = vmax.f32 %v322_v39, %v323_v43  ;;  %v330_v47 = vmax.f32 %v328_v40, %v329_v44  ;;  %v336_v48 = vmax.f32 %v334_v41, %v335_v45 }
 0x115   :  { %v331_v49 = vrot.slane %v330_v47, 1  ;;  %v337_v50 = vrot.slane %v336_v48, 2  ;;  %v381_v51 = vsel %vm380_vm7, %v324_v2, %v379_v46 }
 0x117   :  { %v338_v52 = vmax.f32 %v336_v48, %v337_v50  ;;  %v332_v53 = vmax.f32 %v330_v47, %v331_v49 }
 0x119   :  { %v339_v54 = vrot.slane %v338_v52, 1  ;;  %v383_v55 = vsel %vm382_vm8, %v332_v53, %v381_v51 }
 0x11b   :  { %v340_v56 = vmax.f32 %v338_v52, %v339_v54 }
 0x11d   :  { %v385_v57 = vsel %vm384_vm9, %v340_v56, %v383_v55 }
 0x11e   :  { %700 = vmatmul.mubr.f32.vlgmr.msra.gmra.mrb[0].mxu1 %v385_v57 }
 0x1f1   :  { %v453_v62 = vpop.f32.mrb[0].mxu1 }
 0x1f2   :  { %v454_v63 = vadd.f32 %v585_v61, %v453_v62  ;;  %v701_v0 = vpop.f32.mrb[1].mxu1 }
 0x1f4   :  { %v457_v1 = vmax.f32 %v454_v63, 0.0 }
 0x1f6   :  { %735 = vmatmul.mubr.f32.vlgmr.msra.gmra.mrb[16].mxu0 %v457_v1 }
 0x2c9   :  { %v547_v4 = vpop.f32.mrb[16].mxu0 }
 0x2ca   :  { %v548_v5 = vadd.f32 %v586_v3, %v547_v4  ;;  %v736_v6 = vpop.f32.mrb[17].mxu0 }
 0x2cc   :  { %v551_v7 = vmax.f32 %v548_v5, 0.0 }
 0x2ce   :  { %552 = vst [vmem:[#allocation5] sm:$0xff] %v551_v7 }
 0x2cf   :  { %829 = shalt.err (!%p826_p12)
}
 0x2d0   :  { %s830_s14 = scalar_lea.hbm %s1091_s7, 128 }
 0x2d1   :  { %p831_p13 = scmp.ne.s32.totalorder %s1091_s7, %s830_s14  ;;  %p834_p0 = scmp.lt.u32.totalorder %s830_s14, %s1091_s7 }
 0x2d3   :  { %p836_p1 = pnand %p834_p0, %p831_p13 }
 0x2d5   :  { %839 = shalt.err (!%p836_p1)
}
 0x2d6   :  { %562 = dma.vmem_to_hbm [thread:$0]  %s560_s11, 128, %s1091_s7, [#allocation4]  }
 0x2d7   :  { %842 = dma.done.wait [#allocation4], 128  }
 0x2d8   :  { %843 = vsyncadd [#allocation4], 4294967168 }
 0x2d9   :  { %566 = vsyncpa [#allocation3], 1 }
 0x2da   :  { %567 = vsyncpa [#allocation4], 1 }

</bundles_post_ra>
